<compile_context>
chip_gen: v6e
topology: v6e:2x2x1
jax: 0.10.0
libtpu: 0.0.40
codegen_flags: <defaults>
</compile_context>

<pallas_src>
import jax
import jax.numpy as jnp
import numpy as np
from jax.experimental import pallas as pl
from jax.experimental.pallas import tpu as pltpu


# ----------------------- in-kernel helpers (traced inside the kernel) ---------------

def _is_pow2(n):
    return n > 0 and (n & (n - 1)) == 0


def _shift_matrix(n_fold, length, d):
    """(NL, NL) 0/1 matrix S with (x @ S)[:, j] = x[:, j + d] when j + d stays inside
    the same length-`length` sample segment, else 0 (in-kernel zero padding)."""
    nl = n_fold * length
    src = jax.lax.broadcasted_iota(jnp.int32, (nl, nl), 0)   # source column
    dst = jax.lax.broadcasted_iota(jnp.int32, (nl, nl), 1)   # destination column
    dst_l = dst & (length - 1)                               # position inside sample
    sel = (src == dst + d) & (dst_l + d >= 0) & (dst_l + d < length)
    return jnp.where(sel, 1.0, 0.0).astype(jnp.float32)


def _pool_matrix(n_fold, length):
    """(NL, NL//2) matrix averaging adjacent column pairs == AvgPool1d(2) per sample."""
    nl = n_fold * length
    src = jax.lax.broadcasted_iota(jnp.int32, (nl, nl // 2), 0)
    dst = jax.lax.broadcasted_iota(jnp.int32, (nl, nl // 2), 1)
    sel = (src == 2 * dst) | (src == 2 * dst + 1)
    return jnp.where(sel, 0.5, 0.0).astype(jnp.float32)


def _group_sum_matrix(n_fold, length):
    """(NL, n_fold) matrix summing each sample's length-`length` column segment."""
    nl = n_fold * length
    src = jax.lax.broadcasted_iota(jnp.int32, (nl, n_fold), 0)
    dst = jax.lax.broadcasted_iota(jnp.int32, (nl, n_fold), 1)
    sel = (src >= dst * length) & (src < dst * length + length)
    return jnp.where(sel, 1.0, 0.0).astype(jnp.float32)


def _tile_matrix(n_fold, length):
    """(length, n_fold*length) matrix replicating a (C, length) block n_fold times."""
    nl = n_fold * length
    src = jax.lax.broadcasted_iota(jnp.int32, (length, nl), 0)
    dst = jax.lax.broadcasted_iota(jnp.int32, (length, nl), 1)
    sel = src == (dst & (length - 1))
    return jnp.where(sel, 1.0, 0.0).astype(jnp.float32)


def _avgpool2(x2d, n_fold, length):
    """AvgPool1d(kernel=2, stride=2) on the (C, n_fold*length) folded layout."""
    return jnp.dot(x2d, _pool_matrix(n_fold, length),
                   preferred_element_type=jnp.float32)


def _conv1d_same(x2d, w2, b2, n_fold, length, ksize, leaky, slope=0.2):
    """'Same' Conv1d (odd ksize, padding=ksize//2) on the (Cin, n_fold*length) layout.

    w2: (Cout, ksize*Cin) im2col weight, tap-major ([co, k*Cin+ci] = w[co, ci, k]).
    b2: (Cout, 1). Single MXU contraction over ksize*Cin; LeakyReLU fused on the VPU.
    """
    cin = x2d.shape[0]
    if ksize == 1:
        y = (w2 * x2d if cin == 1
             else jnp.dot(w2, x2d, preferred_element_type=jnp.float32))
        y = y + b2
    else:
        assert ksize % 2 == 1, "synthesized blocks use odd kernel sizes"
        assert _is_pow2(length), "per-sample length must be a power of two"
        pad = ksize // 2
        taps = []
        for k in range(ksize):
            d = k - pad
            if d == 0:
                taps.append(x2d)
            else:
                taps.append(jnp.dot(x2d, _shift_matrix(n_fold, length, d),
                                    preferred_element_type=jnp.float32))
        patches = jnp.concatenate(taps, axis=0)              # (ksize*Cin, NL)
        y = jnp.dot(w2, patches, preferred_element_type=jnp.float32) + b2
    if leaky:
        y = jnp.where(y >= 0.0, y, slope * y)
    return y


# ------------------------------------ modules ---------------------------------------

class ProgressiveDiscriminatorBlock:
    """One progression stage (synthetic, eeggan-style). Holds parameters only; all
    compute runs inside the fused discriminator kernel.

      in_sequence          : Conv1d(1, C, 1)                           ("from signal")
      intermediate_sequence: Conv1d(C, C, K, padding=K//2) + LeakyReLU(0.2) + AvgPool1d(2)
                             (last block: conv + leaky + flatten + Linear -> 1)
      fade_sequence        : AvgPool1d(2)
    """

    def __init__(self, key, n_chans, kernel_size, last=False, flat_features=None):
        assert kernel_size % 2 == 1
        k1, k2, k3 = jax.random.split(key, 3)
        self.n_chans = n_chans
        self.kernel_size = kernel_size
        self.last = last

        # --- natural (PyTorch-like) parameter layouts (kept for reference checks) ---
        self.w_in = jax.random.normal(k1, (n_chans, 1, 1), jnp.float32)
        self.b_in = jnp.zeros((n_chans,), jnp.float32)
        fan_in = n_chans * kernel_size
        self.w_conv = (jax.random.normal(k2, (n_chans, n_chans, kernel_size),
                                         jnp.float32) / jnp.sqrt(fan_in))
        self.b_conv = jnp.zeros((n_chans,), jnp.float32)

        # --- kernel-ready layouts, cached ONCE (no per-call transposes/reshapes) ----
        self.w_in2 = self.w_in.reshape(n_chans, 1)                     # (Cout, K*Cin)
        self.b_in2 = self.b_in.reshape(n_chans, 1)
        # im2col weight, tap-major: [co, k*Cin + ci] = w_conv[co, ci, k]
        self.w_conv2 = jnp.transpose(self.w_conv, (0, 2, 1)).reshape(
            n_chans, kernel_size * n_chans)
        self.b_conv2 = self.b_conv.reshape(n_chans, 1)

        if last:
            assert flat_features is not None and flat_features % n_chans == 0
            self.out_len = flat_features // n_chans
            self.w_fc = (jax.random.normal(k3, (1, flat_features), jnp.float32)
                         / jnp.sqrt(flat_features))
            self.b_fc = jnp.zeros((1,), jnp.float32)
            # PyTorch flatten order of (N, C, L) is c*L + l
            self.w_fc2 = self.w_fc.reshape(n_chans, self.out_len)
            self.b_fc2 = self.b_fc.reshape(1, 1)


def _build_fused_forward(blocks, cur_block, fading, n_batch, l_in):
    """Build one fused forward kernel for a (cur_block, fading, N, L) configuration."""
    n_blocks = len(blocks)
    if fading and cur_block + 1 >= n_blocks:
        raise ValueError("alpha < 1.0 requires a block after cur_block to fade into")
    if not blocks[-1].last:
        raise ValueError("the final block must be the `last` (flatten+Linear) block")

    active = list(range(cur_block, n_blocks))

    # Static length bookkeeping ('same' convs keep L; every non-last block pools /2).
    l_sim = l_in
    for _ in active[:-1]:
        l_sim //= 2
    if l_sim != blocks[-1].out_len:
        raise ValueError(
            f"input length {l_in} inconsistent with the last block's flat_features "
            f"(expects final length {blocks[-1].out_len}, got {l_sim})")

    # Flat parameter list; the kernel reads these refs positionally.
    params = []

    def add(a):
        params.append(a)
        return len(params) - 1

    i_w_in0 = add(blocks[cur_block].w_in2)
    i_b_in0 = add(blocks[cur_block].b_in2)
    if fading:
        i_w_in1 = add(blocks[cur_block + 1].w_in2)
        i_b_in1 = add(blocks[cur_block + 1].b_in2)
    per_block = []
    for i in active:
        blk = blocks[i]
        iw = add(blk.w_conv2)
        ib = add(blk.b_conv2)
        if blk.last:
            per_block.append((iw, ib, add(blk.w_fc2), add(blk.b_fc2)))
        else:
            per_block.append((iw, ib, None, None))
    n_params = len(params)

    def kernel(*refs):
        off = 1 if fading else 0
        x_ref = refs[off]
        p = [r[...] for r in refs[off + 1: off + 1 + n_params]]
        o_ref = refs[off + 1 + n_params]

        length = l_in
        x2d = x_ref[...]                                        # (1, N*L_in)

        # blocks[cur_block].in_sequence : Conv1d(1, C, 1)
        h = _conv1d_same(x2d, p[i_w_in0], p[i_b_in0], n_batch, length, 1, leaky=False)

        if fading:
            alpha = refs[0][0]                                  # SMEM scalar
            # blocks[cur_block].fade_sequence + blocks[cur_block + 1].in_sequence
            t = _avgpool2(x2d, n_batch, length)
            tmp = _conv1d_same(t, p[i_w_in1], p[i_b_in1], n_batch, length // 2, 1,
                               leaky=False)

        for s, i in enumerate(active):
            blk = blocks[i]
            iw, ib, iwf, ibf = per_block[s]
            if fading and i == cur_block + 1:
                h = alpha * h + (1.0 - alpha) * tmp
            # intermediate_sequence: Conv1d(C, C, K, padding=K//2) + LeakyReLU(0.2)
            h = _conv1d_same(h, p[iw], p[ib], n_batch, length, blk.kernel_size,
                             leaky=True, slope=0.2)
            if blk.last:
                # flatten (per-sample, (c, l) order) + Linear(C*L -> 1)
                assert n_batch == 1 or _is_pow2(length)
                wfc = p[iwf]                                    # (C, L)
                wfc_full = (jnp.dot(wfc, _tile_matrix(n_batch, length),
                                    preferred_element_type=jnp.float32)
                            if n_batch > 1 else wfc)            # (C, N*L)
                per_col = h * wfc_full
                g = _group_sum_matrix(n_batch, length)          # (N*L, N)
                out = jnp.sum(jnp.dot(per_col, g, preferred_element_type=jnp.float32),
                              axis=0, keepdims=True) + p[ibf]   # (1, N)
                o_ref[...] = out.astype(o_ref.dtype)
            else:
                h = _avgpool2(h, n_batch, length)               # AvgPool1d(2)
                length //= 2

    vmem = pl.BlockSpec(memory_space=pltpu.MemorySpace.VMEM)
    smem = pl.BlockSpec(memory_space=pltpu.MemorySpace.SMEM)
    in_specs = ([smem] if fading else []) + [vmem] * (1 + n_params)

    call = pl.pallas_call(
        kernel,
        out_shape=jax.ShapeDtypeStruct((1, n_batch), jnp.float32),
        in_specs=in_specs,
        out_specs=vmem,
    )
    return jax.jit(call), tuple(params)


def _build_downsample(n_rows, length, n_pools):
    """Fused repeated AvgPool1d(2) on a (rows, length) slab (rows = batch*channels)."""
    def kernel(x_ref, o_ref):
        h = x_ref[...]
        cur = length
        for _ in range(n_pools):
            h = _avgpool2(h, 1, cur)
            cur //= 2
        o_ref[...] = h.astype(o_ref.dtype)

    vmem = pl.BlockSpec(memory_space=pltpu.MemorySpace.VMEM)
    return jax.jit(pl.pallas_call(
        kernel,
        out_shape=jax.ShapeDtypeStruct((n_rows, length >> n_pools), jnp.float32),
        in_specs=[vmem],
        out_specs=vmem,
    ))


class ProgressiveDiscriminator:
    """JAX/Pallas port of eeggan.modules.progressive.ProgressiveDiscriminator.

    The whole forward pass for the current progression configuration runs as one
    fused Pallas kernel; alpha is fed as an SMEM scalar so fading never recompiles.
    """

    def __init__(self, blocks):
        self.blocks = list(blocks)
        self.cur_block = len(self.blocks) - 1
        self.alpha = 1.0
        self._fwd_cache = {}
        self._ds_cache = {}

    def forward(self, input):
        n, c_in, l_in = input.shape
        assert c_in == 1, "in_sequence is Conv1d(1, C, 1): expects a 1-channel signal"
        fading = self.alpha < 1.0
        key = (n, l_in, self.cur_block, fading)
        if key not in self._fwd_cache:
            self._fwd_cache[key] = _build_fused_forward(
                self.blocks, self.cur_block, fading, n, l_in)
        fn, params = self._fwd_cache[key]
        x2d = input.astype(jnp.float32).reshape(1, n * l_in)   # fold batch into lanes
        if fading:
            out = fn(jnp.asarray([self.alpha], jnp.float32), x2d, *params)
        else:
            out = fn(x2d, *params)
        return out.reshape(n, 1)

    __call__ = forward

    def downsample_to_block(self, input, i_block):
        if i_block <= 0:
            return input
        n, c, l = input.shape
        key = (n, c, l, i_block)
        if key not in self._ds_cache:
            self._ds_cache[key] = _build_downsample(n * c, l, i_block)
        out = self._ds_cache[key](input.astype(jnp.float32).reshape(n * c, l))
        return out.reshape(n, c, l >> i_block)


# --------------------- pure-JAX reference (correctness oracle) ----------------------

def _ref_conv1d_same(x, w, b):
    """x: (N, Cin, L), w: (Cout, Cin, K), b: (Cout,) -> (N, Cout, L) ('same' conv)."""
    ksize = w.shape[2]
    pad = ksize // 2
    length = x.shape[2]
    xp = jnp.pad(x, ((0, 0), (0, 0), (pad, pad)))
    out = jnp.zeros((x.shape[0], w.shape[0], length), jnp.float32)
    for k in range(ksize):
        out = out + jnp.einsum('oc,ncl->nol', w[:, :, k], xp[:, :, k:k + length])
    return out + b[None, :, None]


def _reference_forward(disc, x):
    def pool(h):
        return 0.5 * (h[..., 0::2] + h[..., 1::2])

    def leaky(h):
        return jnp.where(h >= 0, h, 0.2 * h)

    def in_seq(blk, h):
        return _ref_conv1d_same(h, blk.w_in, blk.b_in)

    def inter(blk, h):
        h = leaky(_ref_conv1d_same(h, blk.w_conv, blk.b_conv))
        if blk.last:
            flat = h.reshape(h.shape[0], -1)
            return flat @ blk.w_fc.T + blk.b_fc
        return pool(h)

    fade = False
    alpha = disc.alpha
    inp = x
    for i in range(disc.cur_block, len(disc.blocks)):
        if alpha < 1.0 and i == disc.cur_block:
            tmp = pool(inp)
            tmp = in_seq(disc.blocks[i + 1], tmp)
            fade = True
        if fade and i == disc.cur_block + 1:
            inp = alpha * inp + (1.0 - alpha) * tmp
        if i == disc.cur_block:
            inp = in_seq(disc.blocks[i], inp)
        inp = inter(disc.blocks[i], inp)
    return inp


# -------------------------------------- demo ----------------------------------------

if __name__ == "__main__":
    key = jax.random.PRNGKey(0)
    kx, kb0, kb1, kb2 = jax.random.split(key, 4)

    n_chans, ksize, l0 = 8, 3, 16
    blocks = [
        ProgressiveDiscriminatorBlock(kb0, n_chans, ksize),
        ProgressiveDiscriminatorBlock(kb1, n_chans, ksize),
        ProgressiveDiscriminatorBlock(kb2, n_chans, ksize, last=True,
                                      flat_features=n_chans * (l0 // 4)),
    ]
    disc = ProgressiveDiscriminator(blocks)

    x = jax.random.normal(kx, (2, 1, l0), jnp.float32)    # (batch, channels, length)

    # 1) Default path: cur_block = last block, alpha = 1.0 (lowest-resolution input).
    x_low = disc.downsample_to_block(x, disc.cur_block)   # (2, 1, 4)
    out_default = disc.forward(x_low)
    assert out_default.shape == (2, 1)
    ref_default = _reference_forward(disc, x_low)

    # 2) Fading path: growing from block 0, alpha < 1.0 (fade_sequence, next block's
    #    in_sequence and the alpha mix all run inside the same fused kernel).
    disc.cur_block = 0
    disc.alpha = 0.7
    out_fade = disc.forward(x)
    assert out_fade.shape == (2, 1)
    ref_fade = _reference_forward(disc, x)

    # alpha lives in SMEM: a new alpha re-uses the already-compiled kernel.
    disc.alpha = 0.3
    out_fade2 = disc.forward(x)
    assert out_fade2.shape == (2, 1)
    ref_fade2 = _reference_forward(disc, x)

    # Correctness vs the pure-JAX reference (loose tol: MXU f32 pass decomposition).
    rl = 0.5 * (x[..., 0::2] + x[..., 1::2])
    rl = 0.5 * (rl[..., 0::2] + rl[..., 1::2])
    np.testing.assert_allclose(np.asarray(x_low), np.asarray(rl), rtol=2e-2, atol=2e-2)
    np.testing.assert_allclose(np.asarray(out_default), np.asarray(ref_default),
                               rtol=2e-2, atol=2e-2)
    np.testing.assert_allclose(np.asarray(out_fade), np.asarray(ref_fade),
                               rtol=2e-2, atol=2e-2)
    np.testing.assert_allclose(np.asarray(out_fade2), np.asarray(ref_fade2),
                               rtol=2e-2, atol=2e-2)

    jax.block_until_ready((out_default, out_fade, out_fade2))
    print("KERNEL_OK")
</pallas_src>

<mosaic_0001>
module attributes {stable_mosaic.version = 11 : i64} {
  func.func @kernel(%arg0: memref<2x16xf32, #tpu.memory_space<vmem>>, %arg1: memref<2x4xf32, #tpu.memory_space<vmem>>) attributes {dimension_semantics = [], scalar_prefetch = 0 : i64, scratch_operands = 0 : i64, tpu.core_type = #tpu.core_type<tc>} {
    %c0 = arith.constant 0 : index
    %c0_0 = arith.constant 0 : index
    %0 = vector.load %arg0[%c0, %c0_0] : memref<2x16xf32, #tpu.memory_space<vmem>>, vector<2x16xf32>
    %1 = tpu.iota {dimensions = array<i32: 0>} : vector<16x8xi32>
    %2 = tpu.iota {dimensions = array<i32: 1>} : vector<16x8xi32>
    %c2_i32 = arith.constant 2 : i32
    %3 = vector.broadcast %c2_i32 : i32 to vector<16x8xi32>
    %4 = arith.muli %3, %2 : vector<16x8xi32>
    %5 = arith.cmpi eq, %1, %4 : vector<16x8xi32>
    %c2_i32_1 = arith.constant 2 : i32
    %6 = vector.broadcast %c2_i32_1 : i32 to vector<16x8xi32>
    %7 = arith.muli %6, %2 : vector<16x8xi32>
    %c1_i32 = arith.constant 1 : i32
    %8 = vector.broadcast %c1_i32 : i32 to vector<16x8xi32>
    %9 = arith.addi %7, %8 : vector<16x8xi32>
    %10 = arith.cmpi eq, %1, %9 : vector<16x8xi32>
    %11 = arith.ori %5, %10 : vector<16x8xi1>
    %cst = arith.constant 5.000000e-01 : f32
    %cst_2 = arith.constant 0.000000e+00 : f32
    %12 = vector.broadcast %cst : f32 to vector<16x8xf32>
    %13 = vector.broadcast %cst_2 : f32 to vector<16x8xf32>
    %14 = arith.select %11, %12, %13 : vector<16x8xi1>, vector<16x8xf32>
    %cst_3 = arith.constant dense<0.000000e+00> : vector<2x8xf32>
    %15 = tpu.matmul %0, %14, %cst_3 {dimension_numbers = #tpu.dot_dimension_numbers<[1], [0], [0], [1], [0, 0, 1, 1], [], []>} : vector<2x16xf32>, vector<16x8xf32>, vector<2x8xf32> -> vector<2x8xf32>
    %16 = tpu.iota {dimensions = array<i32: 0>} : vector<8x4xi32>
    %17 = tpu.iota {dimensions = array<i32: 1>} : vector<8x4xi32>
    %c2_i32_4 = arith.constant 2 : i32
    %18 = vector.broadcast %c2_i32_4 : i32 to vector<8x4xi32>
    %19 = arith.muli %18, %17 : vector<8x4xi32>
    %20 = arith.cmpi eq, %16, %19 : vector<8x4xi32>
    %c2_i32_5 = arith.constant 2 : i32
    %21 = vector.broadcast %c2_i32_5 : i32 to vector<8x4xi32>
    %22 = arith.muli %21, %17 : vector<8x4xi32>
    %c1_i32_6 = arith.constant 1 : i32
    %23 = vector.broadcast %c1_i32_6 : i32 to vector<8x4xi32>
    %24 = arith.addi %22, %23 : vector<8x4xi32>
    %25 = arith.cmpi eq, %16, %24 : vector<8x4xi32>
    %26 = arith.ori %20, %25 : vector<8x4xi1>
    %cst_7 = arith.constant 5.000000e-01 : f32
    %cst_8 = arith.constant 0.000000e+00 : f32
    %27 = vector.broadcast %cst_7 : f32 to vector<8x4xf32>
    %28 = vector.broadcast %cst_8 : f32 to vector<8x4xf32>
    %29 = arith.select %26, %27, %28 : vector<8x4xi1>, vector<8x4xf32>
    %cst_9 = arith.constant dense<0.000000e+00> : vector<2x4xf32>
    %30 = tpu.matmul %15, %29, %cst_9 {dimension_numbers = #tpu.dot_dimension_numbers<[1], [0], [0], [1], [0, 0, 1, 1], [], []>} : vector<2x8xf32>, vector<8x4xf32>, vector<2x4xf32> -> vector<2x4xf32>
    %c0_10 = arith.constant 0 : index
    %c0_11 = arith.constant 0 : index
    %31 = vector.load %arg1[%c0_10, %c0_11] : memref<2x4xf32, #tpu.memory_space<vmem>>, vector<2x4xf32>
    tpu.vector_store %arg1[%c0_10, %c0_11], %30 {strides = array<i32>} : memref<2x4xf32, #tpu.memory_space<vmem>>, vector<2x4xf32>,
    return
  }
}

</mosaic_0001>

<bundles_post_ra>
// kernel: tpu_custom_call.1
= control target key start
LH: loop header
LB: loop body
LE: loop exit
PB: predicated region body
PF: predicated region fallthrough
CT: control target
= control target key end

     0   :  { %6 = vsyncpa [#allocation3], 0  ;;  %s294_s0 = inlined_call_operand.hbm [shape: f32[2,16], index: 0, kind: input, shape index: {}]   ;;  %s295_s1 = inlined_call_operand.hbm [shape: f32[2,4], index: 1, kind: output, shape index: {}]  }
   0x1   :  { %7 = vsyncpa [#allocation4], 0  ;;  %s273_s6 = smov [#allocation2]  }
   0x2   :  { %s14_s7 = sshll.u32 %s273_s6, 4  ;;  %s15_s7 = int_to_ptr.vmem [resolvable:$true] %s14_s7 }
   0x3   :  { %s237_s8 = scalar_lea.vmem %s15_s7, 32  ;;  %p242_p1 = scmp.lt.s32.totalorder %s15_s7, %s15_s7 }
   0x4   :  { %p238_p0 = scmp.ne.s32.totalorder %s15_s7, %s237_s8  ;;  %p243_p2 = scmp.lt.s32.totalorder %s237_s8, %s237_s8 }
   0x6   :  { %p244_p3 = por %p243_p2, %p242_p1 }
   0x8   :  { %p245_p4 = pnand %p244_p3, %p238_p0 }
   0xa   :  { %248 = shalt.err (!%p245_p4)
}
   0xb   :  { %17 = dma.hbm_to_vmem [thread:$0]  %s294_s0, 32, %s15_s7, [#allocation3]  }
   0xc   :  { %269 = dma.done.wait [#allocation3], 32  }
   0xd   :  { %270 = vsyncadd [#allocation3], 4294967264  ;;  %v22_v0 = vlaneseq  ;;  %v274_v1 = vmov 0.0   ;;  %vm275_vm0 = vmmov 0   ;;  %v276_v7 = vmov 0.5   ;;  %s277_s0 = smov [#allocation5]  }
   0xe   :  { %212 = vmatprep.subr.mxu0 %v274_v1  ;;  %216 = vmatprep.mubr.msk.f32.mxu0 %vm275_vm0, %v274_v1  ;;  %v21_v8 = vld [vmem:[#allocation2] sm:$0x3]  ;;  %vm37_vm7 = vcmask 130048   ;;  %vm111_vm8 = vcmask 64512   ;;  %s193_s11 = sshll.u32 %s277_s0, 4  ;;  %vm185_vm9 = vcmask 25600   ;;  %s194_s11 = int_to_ptr.vmem [resolvable:$true] %s193_s11 }
   0xf   :  { %v23_v2 = vshrl.u32 %v22_v0, 7  ;;  %v26_v3 = vand.u32 127, %v22_v0  ;;  %219 = vmatprep.subr.mxu1 %v274_v1  ;;  %221 = vmatprep.mubr.msk.f32.mxu1 %vm275_vm0, %v274_v1  ;;  %s249_s12 = scalar_lea.vmem %s194_s11, 32  ;;  %p254_p6 = scmp.lt.s32.totalorder %s194_s11, %s194_s11 }
  0x10   :  { %p250_p5 = scmp.ne.s32.totalorder %s194_s11, %s249_s12  ;;  %p255_p7 = scmp.lt.s32.totalorder %s249_s12, %s249_s12 }
  0x11   :  { %v24_v4 = vadd.s32 8, %v23_v2  ;;  %v27_v5 = vmul.u32 2, %v26_v3 }
  0x12   :  { %p256_p8 = por %p255_p7, %p254_p6 }
  0x13   :  { %vm29_vm1 = vcmp.eq.s32.totalorder %v24_v4, %v27_v5  ;;  %v30_v6 = vadd.s32 1, %v27_v5  ;;  %vm28_vm2 = vcmp.eq.s32.totalorder %v23_v2, %v27_v5 }
  0x14   :  { %p257_p9 = pnand %p256_p8, %p250_p5 }
  0x15   :  { %vm32_vm3 = vcmp.eq.s32.totalorder %v24_v4, %v30_v6  ;;  %vm31_vm4 = vcmp.eq.s32.totalorder %v23_v2, %v30_v6 }
  0x16   :  { %vm34_vm5 = vmor %vm29_vm1, %vm32_vm3 }
  0x17   :  { %213 = vmatpush3.msk.msra.mxu0 %vm34_vm5, %v276_v7  ;;  %vm33_vm6 = vmor %vm28_vm2, %vm31_vm4 }
  0x18   :  { %214 = vmatprep.subr.mxu0 %v274_v1  ;;  %220 = vmatpush3.msk.msra.mxu1 %vm33_vm6, %v276_v7 }
  0x19   :  { %215 = vmatpush3.msk.msra.mxu0 %vm33_vm6, %v276_v7 }
  0x1a   :  { %217 = vmatmul.mubr.msk.f32.vlgmr.msra.gmra.mxu0 %vm37_vm7, %v21_v8 }
  0xda   :  { %v107_v9 = vpop.f32.mrf.mxu0 }
  0xdb   :  { %222 = vmatmul.mubr.msk.f32.vlgmr.msra.gmra.mxu1 %vm111_vm8, %v107_v9 }
  0xdc   :  { %v218_v10 = vpop.f32.mrf.mxu0 }
 0x19b   :  { %v181_v11 = vpop.f32.mrf.mxu1 }
 0x19c   :  { %186 = vst.msk [vmem:[#allocation5] sm:$0x3] %vm185_vm9, %v181_v11 }
 0x19d   :  { %v223_v12 = vpop.f32.mrf.mxu1 }
 0x19e   :  { %260 = shalt.err (!%p257_p9)
}
 0x19f   :  { %196 = dma.vmem_to_hbm [thread:$0]  %s194_s11, 32, %s295_s1, [#allocation4]  }
 0x1a0   :  { %271 = dma.done.wait [#allocation4], 32  }
 0x1a1   :  { %272 = vsyncadd [#allocation4], 4294967264 }
 0x1a2   :  { %200 = vsyncpa [#allocation3], 1 }
 0x1a3   :  { %201 = vsyncpa [#allocation4], 1 }

</bundles_post_ra>
